<compile_context>
chip_gen: v7x
topology: tpu7x:2x2x1
jax: 0.10.0
libtpu: 0.0.40
codegen_flags: <defaults>
</compile_context>

<pallas_src>
import functools

import jax
import jax.numpy as jnp
from jax.experimental import pallas as pl
from jax.experimental.pallas import tpu as pltpu


# ---------------------------------------------------------------------------
# Kernel
# ---------------------------------------------------------------------------
def _mlp_kernel(x_ref, w1_ref, b1_ref, w2_ref, b2_ref, o_ref, acc_ref):
    # x_ref:  (tm, in_dim)    w1_ref: (in_dim, th)   b1_ref: (1, th)  f32
    # w2_ref: (th, tn)        b2_ref: (1, tn) f32    o_ref:  (tm, tn)
    # acc_ref: (tm, tn) f32 scratch, resident across the k (hidden) grid axis.
    k = pl.program_id(2)

    @pl.when(k == 0)
    def _():
        acc_ref[...] = jnp.zeros_like(acc_ref)

    # fc1 partial (hidden columns owned by this k step); f32 MXU accumulation,
    # bias + ReLU on the VPU in f32.
    h = jnp.dot(x_ref[...], w1_ref[...], preferred_element_type=jnp.float32)
    h = jnp.maximum(h + b1_ref[...], 0.0)
    # dropout(p=0.0) -> identity
    # fc2 partial contraction over this hidden block, accumulated in f32.
    # h is downcast to the weight dtype only at the MXU input (bf16 fast path
    # when params are bf16).
    acc_ref[...] += jnp.dot(h.astype(w2_ref.dtype), w2_ref[...],
                            preferred_element_type=jnp.float32)

    @pl.when(k == pl.num_programs(2) - 1)
    def _():
        # dropout(p=0.0) -> identity
        o_ref[...] = (acc_ref[...] + b2_ref[...]).astype(o_ref.dtype)


# ---------------------------------------------------------------------------
# VMEM / tile sizing (generation-aware)
# ---------------------------------------------------------------------------
@functools.lru_cache(maxsize=1)
def _vmem_capacity_bytes():
    try:
        return int(pltpu.get_tpu_info().vmem_capacity_bytes)
    except Exception:
        return 64 * 1024 * 1024  # conservative fallback (v7x per-TC VMEM)


def _aligned_divisors(dim, align=128):
    """Descending multiples of `align` that divide `dim`; fallback to [dim]."""
    divs = [d for d in range(align, dim + 1, align) if dim % d == 0]
    if not divs:
        return [dim]
    return sorted(divs, reverse=True)


def _vmem_tile_bytes(tm, th, tn, in_dim, x_it, w_it, out_it):
    """Double-buffered pipeline footprint for one grid step."""
    x_buf = 2 * tm * in_dim * x_it          # x tile (double buffered)
    w1_buf = 2 * in_dim * th * w_it         # w1 slab
    b1_buf = 2 * th * 4                     # f32 bias
    w2_buf = 2 * th * tn * w_it             # w2 slab
    b2_buf = 2 * tn * 4                     # f32 bias
    out_buf = 2 * tm * tn * out_it          # output tile
    acc = tm * tn * 4                       # f32 accumulator scratch
    h_tmp = tm * th * (4 + w_it)            # f32 h intermediate + downcast copy
    return x_buf + w1_buf + b1_buf + w2_buf + b2_buf + out_buf + acc + h_tmp


def _select_tiles(n, in_dim, h_dim, out_d, x_it, w_it, out_it, budget,
                  row_tile_cap, h_tile_cap, n_tile_cap):
    sublane = {4: 8, 2: 16, 1: 32}.get(x_it, 8)

    tm_max = min(row_tile_cap, pl.cdiv(n, sublane) * sublane)
    tm_opts = []
    t = tm_max
    while t >= sublane:
        tm_opts.append(t)
        if t == sublane:
            break
        t = max(sublane, (t // 2 // sublane) * sublane)

    th_all = _aligned_divisors(h_dim)
    th_opts = [d for d in th_all if d <= h_tile_cap] or [min(th_all)]

    tn_all = _aligned_divisors(out_d)
    tn_small = [d for d in tn_all if d <= n_tile_cap] or [min(tn_all)]
    # Prefer tn = out_d (no j axis -> no fc1 recompute / W1 re-streaming per j).
    tn_opts = [out_d] + [d for d in tn_small if d != out_d]

    for tn in tn_opts:
        for tm in tm_opts:          # big tm first: halves weight re-fetch per i
            for th in th_opts:      # then big th: fewer k steps
                if _vmem_tile_bytes(tm, th, tn, in_dim, x_it, w_it,
                                    out_it) <= budget:
                    return tm, th, tn, sublane
    # Fallback: smallest legal tiles even if nominally over budget.
    return tm_opts[-1], th_opts[-1], tn_small[-1], sublane


# ---------------------------------------------------------------------------
# Parameter prep (one-time, outside the per-call path)
# ---------------------------------------------------------------------------
def prepare_params(w1, b1, w2, b2, compute_dtype=None):
    """PyTorch nn.Linear layout -> kernel layout.

    w1: (h_dim, in_dim), b1: (h_dim,), w2: (out_d, h_dim), b2: (out_d,).
    compute_dtype=jnp.bfloat16 casts the weight matrices for the fast bf16 MXU
    path (f32 accumulation is kept inside the kernel); biases stay f32.
    """
    h_dim = w1.shape[0]
    out_d = w2.shape[0]
    w1_t = jnp.asarray(w1).T                       # (in_dim, h_dim)
    w2_t = jnp.asarray(w2).T                       # (h_dim, out_d)
    if compute_dtype is not None:
        w1_t = w1_t.astype(compute_dtype)
        w2_t = w2_t.astype(compute_dtype)
    b1_2d = jnp.asarray(b1).reshape(1, h_dim).astype(jnp.float32)
    b2_2d = jnp.asarray(b2).reshape(1, out_d).astype(jnp.float32)
    return w1_t, b1_2d, w2_t, b2_2d


# ---------------------------------------------------------------------------
# Wrapper
# ---------------------------------------------------------------------------
@functools.partial(jax.jit,
                   static_argnames=("row_tile_cap", "h_tile_cap", "n_tile_cap"))
def mlp_transformer(x, w1_t, b1_2d, w2_t, b2_2d, *,
                    row_tile_cap=512, h_tile_cap=1024, n_tile_cap=512):
    """x: (..., in_dim). Params already in kernel layout (see prepare_params)."""
    orig_shape = x.shape
    orig_dtype = x.dtype
    in_dim = orig_shape[-1]
    h_dim = w1_t.shape[1]
    out_d = w2_t.shape[1]

    xf = x.reshape(-1, in_dim)                     # (N, in_dim)
    # Match the matmul operand dtype to the weights (bf16 MXU fast path when
    # prepare_params used compute_dtype=bf16); accumulation stays f32 in-kernel.
    if xf.dtype != w1_t.dtype:
        xf = xf.astype(w1_t.dtype)
    n = xf.shape[0]

    x_it = jnp.dtype(xf.dtype).itemsize
    w_it = jnp.dtype(w1_t.dtype).itemsize
    out_it = jnp.dtype(orig_dtype).itemsize

    # Generation-aware VMEM budget (~48 MiB on v7x, ~96 MiB on v5e/v6e).
    vmem_capacity = _vmem_capacity_bytes()
    vmem_limit = int(vmem_capacity * 0.75)
    tile_budget = int(vmem_limit * 0.90)

    tm, th, tn, sublane = _select_tiles(
        n, in_dim, h_dim, out_d, x_it, w_it, out_it, tile_budget,
        row_tile_cap, h_tile_cap, n_tile_cap)

    grid_i = pl.cdiv(n, tm)
    grid_j = pl.cdiv(out_d, tn)
    grid_k = h_dim // th            # th always divides h_dim by construction

    # v7x has 2 TensorCores: if the whole problem collapsed into a single
    # parallel program, split the row axis so both cores get work.
    if grid_i == 1 and grid_j == 1 and n > sublane:
        tm = max(sublane, pl.cdiv(pl.cdiv(n, 2), sublane) * sublane)
        grid_i = pl.cdiv(n, tm)

    grid = (grid_i, grid_j, grid_k)

    # Cost estimate reflecting the actual schedule:
    #  - fc1 is recomputed grid_j times (grid_j == 1 in the preferred config),
    #  - W1/W2 are re-fetched once per (i, j) tile, x once per (i, j).
    flops = 2 * n * in_dim * h_dim * grid_j + 2 * n * h_dim * out_d
    bytes_accessed = int(
        n * in_dim * x_it * grid_j
        + in_dim * h_dim * w_it * grid_i * grid_j
        + h_dim * out_d * w_it * grid_i
        + (h_dim + out_d) * 4
        + n * out_d * out_it)
    cost = pl.CostEstimate(flops=int(flops), transcendentals=0,
                           bytes_accessed=bytes_accessed)

    out = pl.pallas_call(
        _mlp_kernel,
        out_shape=jax.ShapeDtypeStruct((n, out_d), orig_dtype),
        grid_spec=pltpu.PrefetchScalarGridSpec(
            num_scalar_prefetch=0,
            grid=grid,
            in_specs=[
                pl.BlockSpec((tm, in_dim), lambda i, j, k: (i, 0)),
                pl.BlockSpec((in_dim, th), lambda i, j, k: (0, k)),
                pl.BlockSpec((1, th),      lambda i, j, k: (0, k)),
                pl.BlockSpec((th, tn),     lambda i, j, k: (k, j)),
                pl.BlockSpec((1, tn),      lambda i, j, k: (0, j)),
            ],
            out_specs=pl.BlockSpec((tm, tn), lambda i, j, k: (i, j)),
            scratch_shapes=[pltpu.VMEM((tm, tn), jnp.float32)],
        ),
        compiler_params=pltpu.CompilerParams(
            dimension_semantics=("parallel", "parallel", "arbitrary"),
            vmem_limit_bytes=vmem_limit,
        ),
        cost_estimate=cost,
    )(xf, w1_t, b1_2d, w2_t, b2_2d)

    return out.reshape(orig_shape[:-1] + (out_d,))


# ---------------------------------------------------------------------------
# Synthetic init + self-test
# ---------------------------------------------------------------------------
def init_params(key, in_dim, h_dim, out_d, dtype=jnp.float32):
    k1, k2, k3, k4 = jax.random.split(key, 4)
    bound1 = 1.0 / jnp.sqrt(in_dim)
    bound2 = 1.0 / jnp.sqrt(h_dim)
    w1 = jax.random.uniform(k1, (h_dim, in_dim), dtype, -bound1, bound1)
    b1 = jax.random.uniform(k2, (h_dim,), dtype, -bound1, bound1)
    w2 = jax.random.uniform(k3, (out_d, h_dim), dtype, -bound2, bound2)
    b2 = jax.random.uniform(k4, (out_d,), dtype, -bound2, bound2)
    return w1, b1, w2, b2


if __name__ == "__main__":
    # MlpTransformer(in_dim=32, h_dim=128) -> out_d defaults to in_dim
    batch, seq, in_dim, h_dim = 2, 8, 32, 128
    out_d = in_dim

    key = jax.random.PRNGKey(0)
    kx, kp = jax.random.split(key)
    x = jax.random.normal(kx, (batch, seq, in_dim), jnp.float32)
    w1, b1, w2, b2 = init_params(kp, in_dim, h_dim, out_d)

    # pure-JAX reference of the PyTorch forward
    h_ref = jnp.maximum(x @ w1.T + b1, 0.0)
    y_ref = h_ref @ w2.T + b2

    # f32 path (tight correctness check)
    params_f32 = prepare_params(w1, b1, w2, b2)
    y32 = jax.block_until_ready(mlp_transformer(x, *params_f32))
    assert y32.shape == (batch, seq, out_d)
    assert jnp.allclose(y32, y_ref, atol=1e-5, rtol=1e-5)

    # bf16 operands + f32 accumulation (MXU fast path), loose check
    params_bf16 = prepare_params(w1, b1, w2, b2, compute_dtype=jnp.bfloat16)
    y16 = jax.block_until_ready(mlp_transformer(x, *params_bf16))
    assert y16.shape == (batch, seq, out_d)
    assert jnp.allclose(y16, y_ref, atol=5e-2, rtol=5e-2)

    print("KERNEL_OK")
</pallas_src>

<mosaic_0001>
module attributes {stable_mosaic.version = 11 : i64} {
  func.func @_mlp_kernel(%arg0: i32, %arg1: i32, %arg2: i32, %arg3: memref<8x32xf32, #tpu.memory_space<vmem>>, %arg4: memref<32x128xf32, #tpu.memory_space<vmem>>, %arg5: memref<1x128xf32, #tpu.memory_space<vmem>>, %arg6: memref<128x32xf32, #tpu.memory_space<vmem>>, %arg7: memref<1x32xf32, #tpu.memory_space<vmem>>, %arg8: memref<8x32xf32, #tpu.memory_space<vmem>>, %arg9: memref<8x32xf32, #tpu.memory_space<vmem>>) attributes {dimension_semantics = [#tpu.dimension_semantics<parallel>, #tpu.dimension_semantics<parallel>, #tpu.dimension_semantics<arbitrary>], iteration_bounds = array<i64: 2, 1, 1>, scalar_prefetch = 0 : i64, scratch_operands = 1 : i64, tpu.core_type = #tpu.core_type<tc>, window_params = [{transform_indices = @transform_0, window_bounds = array<i64: 8, 32>}, {transform_indices = @transform_1, window_bounds = array<i64: 32, 128>}, {transform_indices = @transform_2, window_bounds = array<i64: 1, 128>}, {transform_indices = @transform_3, window_bounds = array<i64: 128, 32>}, {transform_indices = @transform_4, window_bounds = array<i64: 1, 32>}, {transform_indices = @transform_5, window_bounds = array<i64: 8, 32>}]} {
    %c0_i32 = arith.constant 0 : i32
    %0 = arith.cmpi eq, %arg2, %c0_i32 : i32
    %1 = arith.extui %0 : i1 to i32
    %c0_i32_0 = arith.constant 0 : i32
    %2 = arith.cmpi ne, %1, %c0_i32_0 : i32
    scf.if %2 {
      %cst_16 = arith.constant 0.000000e+00 : f32
      %19 = vector.broadcast %cst_16 : f32 to vector<8x32xf32>
      %c0_17 = arith.constant 0 : index
      %c0_18 = arith.constant 0 : index
      %20 = vector.load %arg9[%c0_17, %c0_18] : memref<8x32xf32, #tpu.memory_space<vmem>>, vector<8x32xf32>
      tpu.vector_store %arg9[%c0_17, %c0_18], %19 {strides = array<i32>} : memref<8x32xf32, #tpu.memory_space<vmem>>, vector<8x32xf32>,
    } else {
    }
    %c0 = arith.constant 0 : index
    %c0_1 = arith.constant 0 : index
    %3 = vector.load %arg3[%c0, %c0_1] : memref<8x32xf32, #tpu.memory_space<vmem>>, vector<8x32xf32>
    %c0_2 = arith.constant 0 : index
    %c0_3 = arith.constant 0 : index
    %4 = vector.load %arg4[%c0_2, %c0_3] : memref<32x128xf32, #tpu.memory_space<vmem>>, vector<32x128xf32>
    %cst = arith.constant dense<0.000000e+00> : vector<8x128xf32>
    %5 = tpu.matmul %3, %4, %cst {dimension_numbers = #tpu.dot_dimension_numbers<[1], [0], [0], [1], [0, 0, 1, 1], [], []>} : vector<8x32xf32>, vector<32x128xf32>, vector<8x128xf32> -> vector<8x128xf32>
    %c0_4 = arith.constant 0 : index
    %c0_5 = arith.constant 0 : index
    %6 = vector.load %arg5[%c0_4, %c0_5] : memref<1x128xf32, #tpu.memory_space<vmem>>, vector<1x128xf32>
    %7 = vector.broadcast %6 : vector<1x128xf32> to vector<8x128xf32>
    %8 = arith.addf %5, %7 : vector<8x128xf32>
    %cst_6 = arith.constant 0.000000e+00 : f32
    %9 = vector.broadcast %cst_6 : f32 to vector<8x128xf32>
    %10 = arith.maximumf %8, %9 : vector<8x128xf32>
    %c0_7 = arith.constant 0 : index
    %c0_8 = arith.constant 0 : index
    %11 = vector.load %arg9[%c0_7, %c0_8] : memref<8x32xf32, #tpu.memory_space<vmem>>, vector<8x32xf32>
    %c0_9 = arith.constant 0 : index
    %c0_10 = arith.constant 0 : index
    %12 = vector.load %arg6[%c0_9, %c0_10] : memref<128x32xf32, #tpu.memory_space<vmem>>, vector<128x32xf32>
    %cst_11 = arith.constant dense<0.000000e+00> : vector<8x32xf32>
    %13 = tpu.matmul %10, %12, %cst_11 {dimension_numbers = #tpu.dot_dimension_numbers<[1], [0], [0], [1], [0, 0, 1, 1], [], []>} : vector<8x128xf32>, vector<128x32xf32>, vector<8x32xf32> -> vector<8x32xf32>
    %14 = arith.addf %11, %13 : vector<8x32xf32>
    %c0_12 = arith.constant 0 : index
    %c0_13 = arith.constant 0 : index
    %15 = vector.load %arg9[%c0_12, %c0_13] : memref<8x32xf32, #tpu.memory_space<vmem>>, vector<8x32xf32>
    tpu.vector_store %arg9[%c0_12, %c0_13], %14 {strides = array<i32>} : memref<8x32xf32, #tpu.memory_space<vmem>>, vector<8x32xf32>,
    %c0_i32_14 = arith.constant 0 : i32
    %16 = arith.cmpi eq, %arg2, %c0_i32_14 : i32
    %17 = arith.extui %16 : i1 to i32
    %c0_i32_15 = arith.constant 0 : i32
    %18 = arith.cmpi ne, %17, %c0_i32_15 : i32
    scf.if %18 {
      %c0_16 = arith.constant 0 : index
      %c0_17 = arith.constant 0 : index
      %19 = vector.load %arg9[%c0_16, %c0_17] : memref<8x32xf32, #tpu.memory_space<vmem>>, vector<8x32xf32>
      %c0_18 = arith.constant 0 : index
      %c0_19 = arith.constant 0 : index
      %20 = vector.load %arg7[%c0_18, %c0_19] : memref<1x32xf32, #tpu.memory_space<vmem>>, vector<1x32xf32>
      %21 = vector.broadcast %20 : vector<1x32xf32> to vector<8x32xf32>
      %22 = arith.addf %19, %21 : vector<8x32xf32>
      %c0_20 = arith.constant 0 : index
      %c0_21 = arith.constant 0 : index
      %23 = vector.load %arg8[%c0_20, %c0_21] : memref<8x32xf32, #tpu.memory_space<vmem>>, vector<8x32xf32>
      tpu.vector_store %arg8[%c0_20, %c0_21], %22 {strides = array<i32>} : memref<8x32xf32, #tpu.memory_space<vmem>>, vector<8x32xf32>,
    } else {
    }
    return
  }
  func.func @transform_0(%arg0: i32, %arg1: i32, %arg2: i32) -> (i32, i32) {
    %c0_i32 = arith.constant 0 : i32
    %c0_i32_0 = arith.constant 0 : i32
    return %arg0, %c0_i32 : i32, i32
  }
  func.func @transform_1(%arg0: i32, %arg1: i32, %arg2: i32) -> (i32, i32) {
    %c0_i32 = arith.constant 0 : i32
    %c0_i32_0 = arith.constant 0 : i32
    return %c0_i32, %arg2 : i32, i32
  }
  func.func @transform_2(%arg0: i32, %arg1: i32, %arg2: i32) -> (i32, i32) {
    %c0_i32 = arith.constant 0 : i32
    %c0_i32_0 = arith.constant 0 : i32
    return %c0_i32, %arg2 : i32, i32
  }
  func.func @transform_3(%arg0: i32, %arg1: i32, %arg2: i32) -> (i32, i32) {
    %c0_i32 = arith.constant 0 : i32
    return %arg2, %arg1 : i32, i32
  }
  func.func @transform_4(%arg0: i32, %arg1: i32, %arg2: i32) -> (i32, i32) {
    %c0_i32 = arith.constant 0 : i32
    %c0_i32_0 = arith.constant 0 : i32
    return %c0_i32, %arg1 : i32, i32
  }
  func.func @transform_5(%arg0: i32, %arg1: i32, %arg2: i32) -> (i32, i32) {
    %c0_i32 = arith.constant 0 : i32
    return %arg0, %arg1 : i32, i32
  }
}

</mosaic_0001>

<bundles_post_ra>
// kernel: mlp_transformer.1
= control target key start
LH: loop header
LB: loop body
LE: loop exit
PB: predicated region body
PF: predicated region fallthrough
CT: control target
= control target key end

     0   :  { %10 = vsyncpa [#allocation4], 0  ;;  %s1127_s0 = inlined_call_operand.vmem [shape: f32[16,32], index: 0, kind: input, shape index: {}]   ;;  %s1128_s1 = inlined_call_operand.vmem [shape: f32[32,128], index: 1, kind: input, shape index: {}]   ;;  %s1129_s2 = inlined_call_operand.vmem [shape: f32[1,128], index: 2, kind: input, shape index: {}]   ;;  %s1130_s3 = inlined_call_operand.vmem [shape: f32[128,32], index: 3, kind: input, shape index: {}]   ;;  %s1131_s4 = inlined_call_operand.vmem [shape: f32[1,32], index: 4, kind: input, shape index: {}]   ;;  %s1132_s5 = inlined_call_operand.hbm [shape: f32[16,32], index: 5, kind: output, shape index: {}]  }
   0x1   :  { %12 = vsyncpa [#allocation4 + $0x1], 0  ;;  %s945_s18 = smov 0   ;;  %s947_s19 = smov 0  }
   0x2   :  { %s949_s20 = smov 0   ;;  %s951_s21 = smov 0  }
   0x3   :  { %s953_s22 = smov 0   ;;  %s955_s23 = smov 0  }
   0x4 LB: > { %s657_s24 = sadd.s32 4294967295, %s909_s23   ;;  %s658_s25 = sadd.s32 4294967294, %s909_s23   ;;  %s909_s23 = sphi %s955_s23, %s18_s23   ;;  %s905_s22 = sphi %s953_s22, %s1139_s22   ;;  %s901_s21 = sphi %s951_s21, %s1138_s21   ;;  %s897_s20 = sphi %s949_s20, %s1137_s20   ;;  %s893_s19 = sphi %s947_s19, %s1136_s19   ;;  %s889_s18 = sphi %s945_s18, %s1135_s18  }
   0x5   : > { %s37_s26 = sadd.s32 1, %s905_s22  ;;  %s178_s27 = sadd.s32 1, %s897_s20 }
   0x6   : > { %p39_p0 = scmp.ge.s32.totalorder %s37_s26, 2  ;;  %p188_p1 = scmp.ne.s32.totalorder %s897_s20, %s893_s19 }
   0x7   : > { %p189_p2 = scmp.eq.s32.totalorder %s657_s24, 1  ;;  %p194_p3 = scmp.ne.s32.totalorder %s893_s19, %s889_s18 }
   0x8   : > { %s1141_s26 = smov (%p39_p0, %s37_s26), 0  ;;  %p195_p5 = scmp.eq.s32.totalorder %s658_s25, 1 }
   0x9   : > { %p985_p4 = por %p189_p2, %p188_p1  ;;  %s173_s29 = ssub.s32 %s905_s22, %s1141_s26 }
   0xa   : > { %p665_p6 = scmp.ge.s32.totalorder %s909_s23, 1  ;;  %p176_p7 = scmp.eq.s32.totalorder %s173_s29, 0 }
   0xb   : > { %p992_p8 = por %p195_p5, %p194_p3  ;;  %p251_p9 = scmp.lt.s32.totalorder %s909_s23, 3 }
   0xc   : > { %s998_s6 = scalar_select %p176_p7, %s897_s20, %s178_s27  }
   0xd   : > { %p252_p10 = pnand %p665_p6, %p251_p9 }
   0xe   : > { %v326_v0 = vld [vmem:[%s1128_s1] sm:$0xff] (!%p252_p10)  ;;  %v327_v1 = vld [vmem:[%s1128_s1 + $0x8] sm:$0xff] (!%p252_p10)  ;;  %v328_v2 = vld [vmem:[%s1128_s1 + $0x10] sm:$0xff] (!%p252_p10)  ;;  %v911_v3 = vmov (!%p252_p10), 0.0|0.0   ;;  %vm912_vm0 = vmmov (!%p252_p10), 0   ;;  %v913_v6 = vmov (!%p252_p10), 0.0  }
   0xf   : > { %255 = sbr.rel (%p252_p10) target bundleno = 481 (0x1e1), region = 40  ;;  %743 = vmatprep.subr.bf16.mxu0 (!%p252_p10), %v911_v3  ;;  %v744_v4 = vpack.c.bf16 (!%p252_p10), %v327_v1, %v326_v0  ;;  %v329_v5 = vld [vmem:[%s1128_s1 + $0x18] sm:$0xff] (!%p252_p10)  ;;  %705 = vmatprep.mubr.msk.f32.mxu0 (!%p252_p10), %vm912_vm0, %v913_v6  ;;  %p296_p11 = scmp.lt.s32.totalorder (!%p252_p10), %s901_s21, 1  ;;  %vm323_vm1 = vcmask (!%p252_p10), 261120   ;;  %v413_v7 = vld [vmem:[%s1130_s3] sm:$0xff] (!%p252_p10)  ;;  %v414_v8 = vld [vmem:[%s1130_s3 + $0x8] sm:$0xff] (!%p252_p10) }
  0x10   : > { %324 = vst.msk [vmem:[#allocation2] sm:$0xff] (!%p252_p10), %vm323_vm1, %v913_v6  ;;  %749 = vmatprep.subr.bf16.mxu1 (!%p252_p10), %v911_v3  ;;  %v750_v9 = vpack.c.bf16 (!%p252_p10), %v414_v8, %v413_v7  ;;  %v415_v10 = vld [vmem:[%s1130_s3 + $0x10] sm:$0xff] (!%p252_p10)  ;;  %v416_v11 = vld [vmem:[%s1130_s3 + $0x18] sm:$0xff] (!%p252_p10)  ;;  %740 = vmatprep.mubr.msk.f32.mxu1 (!%p252_p10), %vm912_vm0, %v913_v6  ;;  %v747_v12 = vpack.c.bf16 (!%p252_p10), %v329_v5, %v328_v2  ;;  %v417_v14 = vld [vmem:[%s1130_s3 + $0x20] sm:$0xff] (!%p252_p10)  ;;  %s672_s13 = sshll.u32 (!%p252_p10), %s901_s21, 7 }
  0x11   : > { %745 = vmatpush3.bf16.msra.mxu0 (!%p252_p10), %v744_v4  ;;  %v753_v13 = vpack.c.bf16 (!%p252_p10), %v416_v11, %v415_v10  ;;  %v418_v15 = vld [vmem:[%s1130_s3 + $0x28] sm:$0xff] (!%p252_p10)  ;;  %v419_v18 = vld [vmem:[%s1130_s3 + $0x30] sm:$0xff] (!%p252_p10)  ;;  %v420_v19 = vld [vmem:[%s1130_s3 + $0x38] sm:$0xff] (!%p252_p10)  ;;  %s1079_s24 = scalar_lea.hbm (!%p252_p10), %s1132_s5, %s672_s13 }
  0x12   : > { %746 = vmatprep.subr.bf16.mxu0 (!%p252_p10), %v911_v3  ;;  %751 = vmatpush3.bf16.msra.mxu1 (!%p252_p10), %v750_v9  ;;  %v756_v17 = vpack.c.bf16 (!%p252_p10), %v418_v15, %v417_v14  ;;  %v759_v20 = vpack.c.bf16 (!%p252_p10), %v420_v19, %v419_v18  ;;  %v421_v21 = vld [vmem:[%s1130_s3 + $0x40] sm:$0xff] (!%p252_p10)  ;;  %v422_v22 = vld [vmem:[%s1130_s3 + $0x48] sm:$0xff] (!%p252_p10)  ;;  %v423_v24 = vld [vmem:[%s1130_s3 + $0x50] sm:$0xff] (!%p252_p10) }
  0x13   : > { %752 = vmatprep.subr.bf16.mxu1 (!%p252_p10), %v911_v3  ;;  %v762_v23 = vpack.c.bf16 (!%p252_p10), %v422_v22, %v421_v21  ;;  %v424_v25 = vld [vmem:[%s1130_s3 + $0x58] sm:$0xff] (!%p252_p10)  ;;  %v425_v27 = vld [vmem:[%s1130_s3 + $0x60] sm:$0xff] (!%p252_p10)  ;;  %v426_v28 = vld [vmem:[%s1130_s3 + $0x68] sm:$0xff] (!%p252_p10) }
  0x14   : > { %v765_v26 = vpack.c.bf16 (!%p252_p10), %v424_v25, %v423_v24  ;;  %v768_v29 = vpack.c.bf16 (!%p252_p10), %v426_v28, %v425_v27  ;;  %v427_v30 = vld [vmem:[%s1130_s3 + $0x70] sm:$0xff] (!%p252_p10)  ;;  %v428_v31 = vld [vmem:[%s1130_s3 + $0x78] sm:$0xff] (!%p252_p10)  ;;  %v668_v33 = vld [vmem:[%s1129_s2] ss:$0 sm:$0xff] (!%p252_p10) }
  0x15   : > { %748 = vmatpush3.bf16.msra.mxu0 (!%p252_p10), %v747_v12  ;;  %v771_v32 = vpack.c.bf16 (!%p252_p10), %v428_v31, %v427_v30  ;;  %v670_v42 = vld [vmem:[%s1131_s4] ss:$0 sm:$0xff] (!%p252_p10) }
  0x16   : > { %s297_s8 = scalar_select %p296_p11, %s901_s21, 1  ;;  %754 = vmatpush3.bf16.msra.mxu1 %v753_v13 }
  0x17   : > { %755 = vmatprep.subr.bf16.mxu1 %v911_v3  ;;  %v412_v38 = vld [vmem:[#allocation2] sm:$0xff]  ;;  %s914_s21 = smov [#allocation3]  }
  0x18   : > { %s667_s9 = sshll.u32 %s297_s8, 3  ;;  %s835_s29 = sshll.u32 %s914_s21, 4  ;;  %s836_s29 = int_to_ptr.vmem [resolvable:$false] %s835_s29 }
  0x19   : > { %s299_s16 = scalar_lea.vmem %s1127_s0, %s667_s9  ;;  %s293_s9 = sand.u32 1, %s893_s19  }
  0x1a   : > { %v325_v16 = vld [vmem:[%s299_s16] sm:$0xff]  ;;  %757 = vmatpush3.bf16.msra.mxu1 %v756_v17  ;;  %s666_s10 = sshll.u32 %s293_s9, 3  ;;  %s515_s25 = scalar_lea.sflag [#allocation4], %s293_s9 }
  0x1b   : > { %706 = vmatmul.mubr.msk.f32.vlgmr.msra.gmra.mrb[0].mxu0 %vm323_vm1, %v325_v16  ;;  %758 = vmatprep.subr.bf16.mxu1 %v911_v3  ;;  %s295_s14 = scalar_lea.vmem [#allocation3], %s666_s10  ;;  %s837_s7 = scalar_lea.vmem %s836_s29, 256 }
  0x1c   : > { %s529_s15 = sshll.u32 %s295_s14, 4  ;;  %s1081_s15 = int_to_ptr.vmem [resolvable:$true] %s529_s15 }
  0x1d   : > { %s831_s27 = scalar_lea.vmem %s1081_s15, 128  ;;  %p838_p1 = scmp.lt.s32.totalorder %s1081_s15, %s836_s29 }
  0x1e   : > { %760 = vmatpush3.bf16.msra.mxu1 %v759_v20  ;;  %p832_p12 = scmp.ne.s32.totalorder %s1081_s15, %s831_s27  ;;  %p839_p2 = scmp.lt.s32.totalorder %s837_s7, %s831_s27 }
  0x1f   : > { %761 = vmatprep.subr.bf16.mxu1 %v911_v3 }
  0x20   : > { %p833_p13 = pnand %p832_p12, %p985_p4  ;;  %p840_p3 = por %p839_p2, %p838_p1 }
  0x22   : > { %763 = vmatpush3.bf16.msra.mxu1 %v762_v23  ;;  %p834_p0 = pneg %p833_p13 }
  0x23   : > { %764 = vmatprep.subr.bf16.mxu1 %v911_v3 }
  0x24   : > { %p841_p5 = pnand %p840_p3, %p834_p0 }
  0x26   : > { %766 = vmatpush3.bf16.msra.mxu1 %v765_v26 }
  0x27   : > { %767 = vmatprep.subr.bf16.mxu1 %v911_v3 }
  0x2a   : > { %769 = vmatpush3.bf16.msra.mxu1 %v768_v29 }
  0x2b   : > { %770 = vmatprep.subr.bf16.mxu1 %v911_v3 }
  0x2e   : > { %772 = vmatpush3.bf16.msra.mxu1 %v771_v32 }
  0xee   : > { %v407_v34 = vpop.f32.mrb[0].mxu0 }
  0xef   : > { %v408_v35 = vadd.f32 %v668_v33, %v407_v34  ;;  %v707_v36 = vpop.f32.mrb[1].mxu0 }
  0xf1   : > { %v411_v37 = vmax.f32 %v408_v35, 0.0 }
  0xf3   : > { %741 = vmatmul.mubr.f32.vlgmr.msra.gmra.mrb[0].mxu1 %v411_v37 }
 0x1c6   : > { %v495_v39 = vpop.f32.mrb[0].mxu1 }
 0x1c7   : > { %v499_v40 = vadd.f32 %v495_v39, %v412_v38  ;;  %v742_v41 = vpop.f32.mrb[1].mxu1 }
 0x1c9   : > { %500 = vst.msk [vmem:[#allocation2] sm:$0xff] %vm323_vm1, %v499_v40 }
 0x1d0   : > { %v504_v43 = vld [vmem:[#allocation2] sm:$0xff] }
 0x1d1   : > { %v512_v44 = vadd.f32 %v670_v42, %v504_v43 }
 0x1d3   : > { %513 = vst.msk [vmem:[%s295_s14] sm:$0xff] %vm323_vm1, %v512_v44 }
 0x1d4   : > { %844 = shalt.err (!%p841_p5)
}
 0x1d5   : > { %s845_s8 = scalar_lea.hbm %s1079_s24, 128  ;;  %s849_s11 = scalar_lea.hbm %s1132_s5, 256 }
 0x1d6   : > { %p846_p6 = scmp.ne.s32.totalorder %s1079_s24, %s845_s8  ;;  %p850_p10 = scmp.lt.u32.totalorder %s1079_s24, %s1132_s5 }
 0x1d7   : > { %p851_p11 = scmp.lt.u32.totalorder %s849_s11, %s845_s8  ;;  %p853_p13 = scmp.lt.u32.totalorder %s845_s8, %s1079_s24 }
 0x1d8   : > { %p847_p7 = pnand %p846_p6, %p985_p4 }
 0x1d9   : > { %p852_p12 = por %p851_p11, %p850_p10 }
 0x1da   : > { %p848_p9 = pneg %p847_p7 }
 0x1db   : > { %p854_p0 = por %p853_p13, %p852_p12 }
 0x1dd   : > { %p855_p1 = pnand %p854_p0, %p848_p9 }
 0x1df   : > { %858 = shalt.err (!%p855_p1)
}
 0x1e0   : > { %773 = dma.vmem_to_hbm [thread:$0]  (%p985_p4), %s1081_s15, 128, %s1079_s24, %s515_s25  }
 0x1e1 PF: > { %p779_p2 = scmp.ge.s32.totalorder %s909_s23, 2  ;;  %s541_s14 = sand.u32 1, %s889_s18  }
 0x1e2   : > { %s542_s16 = scalar_lea.sflag [#allocation4], %s541_s14 }
 0x1e3   : > { %p776_p3 = pnand %p779_p2, %p992_p8 }
 0x1e5   : > { %884 = dma.done.wait (!%p776_p3), %s542_s16, 128  }
 0x1e6   : > { %886 = vsyncadd (!%p776_p3), %s542_s16, 4294967168  ;;  %s18_s23 = sadd.s32 1, %s909_s23   ;;  %s1135_s18 = smov %s893_s19 }
 0x1e7   : > { %p15_p5 = scmp.ge.s32.totalorder %s18_s23, 4   ;;  %s1136_s19 = smov %s897_s20 }
 0x1e8   : > { %s1137_s20 = smov %s998_s6  ;;  %s1138_s21 = smov %s905_s22 }
 0x1e9   : > { %s1139_s22 = smov %s1141_s26  ;;  %17 = sbr.rel (!%p15_p5) target bundleno = 4 (0x4), region = 95 }
 0x1f0   :  { %547 = vsyncpa [#allocation4], 1 }
 0x1f1   :  { %549 = vsyncpa [#allocation4 + $0x1], 1 }

</bundles_post_ra>
